<compile_context>
chip_gen: v5e
topology: v5e:2x2
jax: 0.10.0
libtpu: 0.0.40
codegen_flags: <defaults>
</compile_context>

<pallas_src>
import jax
import jax.numpy as jnp
from jax.experimental import pallas as pl
from jax.experimental.pallas import tpu as pltpu


# config.encoder (Dreamer defaults; depth scaled down for the small demo)
KERNEL_SIZE = 4      # config.encoder.kernel_size
STRIDE = 2           # config.encoder.stride
DEPTH = 8            # config.encoder.depth (Dreamer default is 32)


def _activation(x):
    # getattr(nn, config.encoder.activation)() -> nn.ReLU() in the Dreamer config.
    return jnp.maximum(x, 0.0)


def _round_up(n, m):
    return ((n + m - 1) // m) * m


def conv_gemm_kernel(w_ref, b_ref, p_ref, o_ref):
    """One M-tile of one conv layer:  o = relu(W @ P + b)   (transposed, lane-dense).

    w_ref : [Cout, K*K*Cin]  bf16  conv weights in GEMM form, grid-resident
    b_ref : [Cout, 1]        f32   bias column, grid-resident
    p_ref : [K*K*Cin, TM]    bf16  im2col patches, M = B*Ho*Wo on lanes
    o_ref : [Cout, TM]       f32   Cout multiple of 8, TM multiple of 128 -> unmasked vst
    """
    acc = jnp.dot(w_ref[...], p_ref[...], preferred_element_type=jnp.float32)
    acc = acc + b_ref[...]                      # lane-broadcast of the bias column
    o_ref[...] = _activation(acc).astype(o_ref.dtype)


def _im2col_T(x_nhwc, k, s):
    """[B,H,W,C] -> transposed patch matrix [k*k*C, B*Ho*Wo]; taps ordered (kh, kw, c).

    Pure layout ops (strided slices + concat + transpose) executed by XLA."""
    B, H, W, C = x_nhwc.shape
    Ho = (H - k) // s + 1
    Wo = (W - k) // s + 1
    taps = []
    for kh in range(k):
        for kw in range(k):
            taps.append(x_nhwc[:, kh:kh + s * Ho:s, kw:kw + s * Wo:s, :])   # [B,Ho,Wo,C]
    p = jnp.concatenate(taps, axis=-1)                   # [B,Ho,Wo,k*k*C]
    return p.reshape(B * Ho * Wo, k * k * C).T, Ho, Wo   # [k*k*C, M]


def conv2d_act(x_nhwc, w2dT, b_col, *, k, s, tm_max=512):
    """Conv2d(valid, stride=s) + ReLU; all arithmetic runs in the Pallas GEMM kernel."""
    B = x_nhwc.shape[0]
    cout, kkc = w2dT.shape

    pT, Ho, Wo = _im2col_T(x_nhwc, k, s)
    M = pT.shape[1]
    tm = min(tm_max, _round_up(M, 128))                  # lane tile, multiple of 128
    m_pad = _round_up(M, tm)                             # ragged tail padded away
    pT = jnp.pad(pT, ((0, 0), (0, m_pad - M))).astype(jnp.bfloat16)

    y = pl.pallas_call(
        conv_gemm_kernel,
        grid=(m_pad // tm,),
        in_specs=[
            pl.BlockSpec((cout, kkc), lambda m: (0, 0)),   # weights: VMEM-resident
            pl.BlockSpec((cout, 1), lambda m: (0, 0)),     # bias:    VMEM-resident
            pl.BlockSpec((kkc, tm), lambda m: (0, m)),     # patch tile (double-buffered)
        ],
        out_specs=pl.BlockSpec((cout, tm), lambda m: (0, m)),
        out_shape=jax.ShapeDtypeStruct((cout, m_pad), jnp.float32),
        compiler_params=pltpu.CompilerParams(dimension_semantics=("parallel",)),
    )(w2dT, b_col, pT)

    # Un-transpose the lane-dense [Cout, M] slab back to NHWC (layout plumbing only).
    return y[:, :M].T.reshape(B, Ho, Wo, cout)


def encoder_forward(x, params):
    """Equivalent of horizontal_forward(self.network, x, input_shape=observationShape)."""
    C, H, W = params["observation_shape"]
    batch_shape = x.shape[:-3]
    if batch_shape == ():
        batch_shape = (1,)
    y = x.reshape((-1, C, H, W))
    y = jnp.transpose(y, (0, 2, 3, 1))            # NCHW -> NHWC (channels on lanes)
    for (w2dT, b_col) in params["layers_gemm"]:
        y = conv2d_act(y, w2dT, b_col, k=KERNEL_SIZE, s=STRIDE)
    y = jnp.transpose(y, (0, 3, 1, 2))            # back to NCHW so flatten order == torch
    return y.reshape(batch_shape + (-1,))


def init_params(key, observation_shape, depth, k):
    """Synthetic parameters matching nn.Conv2d shapes, plus the precomputed GEMM form."""
    cin = observation_shape[0]
    chans = [cin, depth, depth * 2, depth * 4, depth * 8]
    keys = jax.random.split(key, 2 * (len(chans) - 1))
    layers_conv, layers_gemm = [], []
    for i in range(len(chans) - 1):
        ci, co = chans[i], chans[i + 1]
        bound = (ci * k * k) ** -0.5
        w = jax.random.uniform(keys[2 * i], (co, ci, k, k), jnp.float32, -bound, bound)
        b = jax.random.uniform(keys[2 * i + 1], (co,), jnp.float32, -bound, bound)
        # bf16-representable values so the bf16-operand MXU path and the f32 XLA
        # reference multiply identical values (accumulation stays f32 in both paths).
        w = w.astype(jnp.bfloat16).astype(jnp.float32)
        b = b.astype(jnp.bfloat16).astype(jnp.float32)
        layers_conv.append((w, b))
        # Precompute GEMM weights once: [Cout,Cin,Kh,Kw] -> [Cout, Kh*Kw*Cin] in bf16
        # (matches the (kh, kw, c) im2col tap order); bias as an f32 column for the
        # lane-broadcast against the [Cout, M] output.
        w2dT = jnp.transpose(w, (0, 2, 3, 1)).reshape(co, k * k * ci).astype(jnp.bfloat16)
        layers_gemm.append((w2dT, b.reshape(co, 1)))
    return {"observation_shape": observation_shape,
            "layers_conv": layers_conv, "layers_gemm": layers_gemm}


def reference_forward(x, params):
    """Plain-XLA reference with the same bf16-operand / f32-accumulate policy."""
    C, H, W = params["observation_shape"]
    batch_shape = x.shape[:-3]
    if batch_shape == ():
        batch_shape = (1,)
    y = x.reshape((-1, C, H, W))
    for (w, b) in params["layers_conv"]:
        # The Pallas path rounds each layer's input activation to bf16 before the MXU;
        # apply the same rounding here so both paths see identical products.
        y = y.astype(jnp.bfloat16).astype(jnp.float32)
        y = jax.lax.conv_general_dilated(
            y, w, window_strides=(STRIDE, STRIDE), padding="VALID",
            dimension_numbers=("NCHW", "OIHW", "NCHW"))
        y = _activation(y + b.reshape(1, -1, 1, 1))
    return y.reshape(batch_shape + (-1,))


if __name__ == "__main__":
    # Small config: batch=2, observationShape=(3, 64, 64), depth=8, kernel=4, stride=2
    B = 2
    OBS_SHAPE = (3, 64, 64)

    key = jax.random.PRNGKey(0)
    kp, kx = jax.random.split(key)
    params = init_params(kp, OBS_SHAPE, DEPTH, KERNEL_SIZE)
    x = jax.random.normal(kx, (B,) + OBS_SHAPE, jnp.float32)
    x = x.astype(jnp.bfloat16).astype(jnp.float32)   # bf16-representable inputs

    fwd = jax.jit(lambda xx: encoder_forward(xx, params))
    out = jax.block_until_ready(fwd(x))

    ref = reference_forward(x, params)
    feat = DEPTH * 8 * 2 * 2        # 64 channels x 2 x 2 spatial after 4 stride-2 convs
    assert out.shape == (B, feat), out.shape
    max_err = float(jnp.max(jnp.abs(out - ref)))
    assert jnp.allclose(out, ref, atol=2e-3, rtol=2e-3), max_err

    print("KERNEL_OK")
</pallas_src>

<mosaic_0001>
module attributes {stable_mosaic.version = 11 : i64} {
  func.func @conv_gemm_kernel(%arg0: i32, %arg1: memref<8x48xbf16, #tpu.memory_space<vmem>>, %arg2: memref<8x1xf32, #tpu.memory_space<vmem>>, %arg3: memref<48x512xbf16, #tpu.memory_space<vmem>>, %arg4: memref<8x512xf32, #tpu.memory_space<vmem>>) attributes {dimension_semantics = [#tpu.dimension_semantics<parallel>], iteration_bounds = array<i64: 4>, scalar_prefetch = 0 : i64, scratch_operands = 0 : i64, tpu.core_type = #tpu.core_type<tc>, window_params = [{pipeline_mode = #tpu.pipeline_mode<synchronous>, transform_indices = @transform_0, window_bounds = array<i64: 8, 48>}, {pipeline_mode = #tpu.pipeline_mode<synchronous>, transform_indices = @transform_1, window_bounds = array<i64: 8, 1>}, {transform_indices = @transform_2, window_bounds = array<i64: 48, 512>}, {transform_indices = @transform_3, window_bounds = array<i64: 8, 512>}]} {
    %c0 = arith.constant 0 : index
    %c0_0 = arith.constant 0 : index
    %0 = vector.load %arg1[%c0, %c0_0] : memref<8x48xbf16, #tpu.memory_space<vmem>>, vector<8x48xbf16>
    %c0_1 = arith.constant 0 : index
    %c0_2 = arith.constant 0 : index
    %1 = vector.load %arg3[%c0_1, %c0_2] : memref<48x512xbf16, #tpu.memory_space<vmem>>, vector<48x512xbf16>
    %cst = arith.constant dense<0.000000e+00> : vector<8x512xf32>
    %2 = tpu.matmul %0, %1, %cst {dimension_numbers = #tpu.dot_dimension_numbers<[1], [0], [0], [1], [0, 0, 1, 1], [], []>} : vector<8x48xbf16>, vector<48x512xbf16>, vector<8x512xf32> -> vector<8x512xf32>
    %c0_3 = arith.constant 0 : index
    %c0_4 = arith.constant 0 : index
    %3 = vector.load %arg2[%c0_3, %c0_4] : memref<8x1xf32, #tpu.memory_space<vmem>>, vector<8x1xf32>
    %4 = vector.broadcast %3 : vector<8x1xf32> to vector<8x512xf32>
    %5 = arith.addf %2, %4 : vector<8x512xf32>
    %cst_5 = arith.constant 0.000000e+00 : f32
    %6 = vector.broadcast %cst_5 : f32 to vector<8x512xf32>
    %7 = arith.maximumf %5, %6 : vector<8x512xf32>
    %c0_6 = arith.constant 0 : index
    %c0_7 = arith.constant 0 : index
    %8 = vector.load %arg4[%c0_6, %c0_7] : memref<8x512xf32, #tpu.memory_space<vmem>>, vector<8x512xf32>
    tpu.vector_store %arg4[%c0_6, %c0_7], %7 {strides = array<i32>} : memref<8x512xf32, #tpu.memory_space<vmem>>, vector<8x512xf32>,
    return
  }
  func.func @transform_0(%arg0: i32) -> (i32, i32) {
    %c0_i32 = arith.constant 0 : i32
    %c0_i32_0 = arith.constant 0 : i32
    %c0_i32_1 = arith.constant 0 : i32
    return %c0_i32, %c0_i32_0 : i32, i32
  }
  func.func @transform_1(%arg0: i32) -> (i32, i32) {
    %c0_i32 = arith.constant 0 : i32
    %c0_i32_0 = arith.constant 0 : i32
    %c0_i32_1 = arith.constant 0 : i32
    return %c0_i32, %c0_i32_0 : i32, i32
  }
  func.func @transform_2(%arg0: i32) -> (i32, i32) {
    %c0_i32 = arith.constant 0 : i32
    %c0_i32_0 = arith.constant 0 : i32
    return %c0_i32, %arg0 : i32, i32
  }
  func.func @transform_3(%arg0: i32) -> (i32, i32) {
    %c0_i32 = arith.constant 0 : i32
    %c0_i32_0 = arith.constant 0 : i32
    return %c0_i32, %arg0 : i32, i32
  }
}

module attributes {stable_mosaic.version = 11 : i64} {
  func.func @conv_gemm_kernel(%arg0: i32, %arg1: memref<16x128xbf16, #tpu.memory_space<vmem>>, %arg2: memref<16x1xf32, #tpu.memory_space<vmem>>, %arg3: memref<128x512xbf16, #tpu.memory_space<vmem>>, %arg4: memref<16x512xf32, #tpu.memory_space<vmem>>) attributes {dimension_semantics = [#tpu.dimension_semantics<parallel>], iteration_bounds = array<i64: 1>, scalar_prefetch = 0 : i64, scratch_operands = 0 : i64, tpu.core_type = #tpu.core_type<tc>, window_params = [{pipeline_mode = #tpu.pipeline_mode<synchronous>, transform_indices = @transform_0, window_bounds = array<i64: 16, 128>}, {pipeline_mode = #tpu.pipeline_mode<synchronous>, transform_indices = @transform_1, window_bounds = array<i64: 16, 1>}, {transform_indices = @transform_2, window_bounds = array<i64: 128, 512>}, {transform_indices = @transform_3, window_bounds = array<i64: 16, 512>}]} {
    %c0 = arith.constant 0 : index
    %c0_0 = arith.constant 0 : index
    %0 = vector.load %arg1[%c0, %c0_0] : memref<16x128xbf16, #tpu.memory_space<vmem>>, vector<16x128xbf16>
    %c0_1 = arith.constant 0 : index
    %c0_2 = arith.constant 0 : index
    %1 = vector.load %arg3[%c0_1, %c0_2] : memref<128x512xbf16, #tpu.memory_space<vmem>>, vector<128x512xbf16>
    %cst = arith.constant dense<0.000000e+00> : vector<16x512xf32>
    %2 = tpu.matmul %0, %1, %cst {dimension_numbers = #tpu.dot_dimension_numbers<[1], [0], [0], [1], [0, 0, 1, 1], [], []>} : vector<16x128xbf16>, vector<128x512xbf16>, vector<16x512xf32> -> vector<16x512xf32>
    %c0_3 = arith.constant 0 : index
    %c0_4 = arith.constant 0 : index
    %3 = vector.load %arg2[%c0_3, %c0_4] : memref<16x1xf32, #tpu.memory_space<vmem>>, vector<16x1xf32>
    %4 = vector.broadcast %3 : vector<16x1xf32> to vector<16x512xf32>
    %5 = arith.addf %2, %4 : vector<16x512xf32>
    %cst_5 = arith.constant 0.000000e+00 : f32
    %6 = vector.broadcast %cst_5 : f32 to vector<16x512xf32>
    %7 = arith.maximumf %5, %6 : vector<16x512xf32>
    %c0_6 = arith.constant 0 : index
    %c0_7 = arith.constant 0 : index
    %8 = vector.load %arg4[%c0_6, %c0_7] : memref<16x512xf32, #tpu.memory_space<vmem>>, vector<16x512xf32>
    tpu.vector_store %arg4[%c0_6, %c0_7], %7 {strides = array<i32>} : memref<16x512xf32, #tpu.memory_space<vmem>>, vector<16x512xf32>,
    return
  }
  func.func @transform_0(%arg0: i32) -> (i32, i32) {
    %c0_i32 = arith.constant 0 : i32
    %c0_i32_0 = arith.constant 0 : i32
    %c0_i32_1 = arith.constant 0 : i32
    return %c0_i32, %c0_i32_0 : i32, i32
  }
  func.func @transform_1(%arg0: i32) -> (i32, i32) {
    %c0_i32 = arith.constant 0 : i32
    %c0_i32_0 = arith.constant 0 : i32
    %c0_i32_1 = arith.constant 0 : i32
    return %c0_i32, %c0_i32_0 : i32, i32
  }
  func.func @transform_2(%arg0: i32) -> (i32, i32) {
    %c0_i32 = arith.constant 0 : i32
    %c0_i32_0 = arith.constant 0 : i32
    return %c0_i32, %arg0 : i32, i32
  }
  func.func @transform_3(%arg0: i32) -> (i32, i32) {
    %c0_i32 = arith.constant 0 : i32
    %c0_i32_0 = arith.constant 0 : i32
    return %c0_i32, %arg0 : i32, i32
  }
}

module attributes {stable_mosaic.version = 11 : i64} {
  func.func @conv_gemm_kernel(%arg0: i32, %arg1: memref<32x256xbf16, #tpu.memory_space<vmem>>, %arg2: memref<32x1xf32, #tpu.memory_space<vmem>>, %arg3: memref<256x128xbf16, #tpu.memory_space<vmem>>, %arg4: memref<32x128xf32, #tpu.memory_space<vmem>>) attributes {dimension_semantics = [#tpu.dimension_semantics<parallel>], iteration_bounds = array<i64: 1>, scalar_prefetch = 0 : i64, scratch_operands = 0 : i64, tpu.core_type = #tpu.core_type<tc>, window_params = [{pipeline_mode = #tpu.pipeline_mode<synchronous>, transform_indices = @transform_0, window_bounds = array<i64: 32, 256>}, {pipeline_mode = #tpu.pipeline_mode<synchronous>, transform_indices = @transform_1, window_bounds = array<i64: 32, 1>}, {transform_indices = @transform_2, window_bounds = array<i64: 256, 128>}, {transform_indices = @transform_3, window_bounds = array<i64: 32, 128>}]} {
    %c0 = arith.constant 0 : index
    %c0_0 = arith.constant 0 : index
    %0 = vector.load %arg1[%c0, %c0_0] : memref<32x256xbf16, #tpu.memory_space<vmem>>, vector<32x256xbf16>
    %c0_1 = arith.constant 0 : index
    %c0_2 = arith.constant 0 : index
    %1 = vector.load %arg3[%c0_1, %c0_2] : memref<256x128xbf16, #tpu.memory_space<vmem>>, vector<256x128xbf16>
    %cst = arith.constant dense<0.000000e+00> : vector<32x128xf32>
    %2 = tpu.matmul %0, %1, %cst {dimension_numbers = #tpu.dot_dimension_numbers<[1], [0], [0], [1], [0, 0, 1, 1], [], []>} : vector<32x256xbf16>, vector<256x128xbf16>, vector<32x128xf32> -> vector<32x128xf32>
    %c0_3 = arith.constant 0 : index
    %c0_4 = arith.constant 0 : index
    %3 = vector.load %arg2[%c0_3, %c0_4] : memref<32x1xf32, #tpu.memory_space<vmem>>, vector<32x1xf32>
    %4 = vector.broadcast %3 : vector<32x1xf32> to vector<32x128xf32>
    %5 = arith.addf %2, %4 : vector<32x128xf32>
    %cst_5 = arith.constant 0.000000e+00 : f32
    %6 = vector.broadcast %cst_5 : f32 to vector<32x128xf32>
    %7 = arith.maximumf %5, %6 : vector<32x128xf32>
    %c0_6 = arith.constant 0 : index
    %c0_7 = arith.constant 0 : index
    %8 = vector.load %arg4[%c0_6, %c0_7] : memref<32x128xf32, #tpu.memory_space<vmem>>, vector<32x128xf32>
    tpu.vector_store %arg4[%c0_6, %c0_7], %7 {strides = array<i32>} : memref<32x128xf32, #tpu.memory_space<vmem>>, vector<32x128xf32>,
    return
  }
  func.func @transform_0(%arg0: i32) -> (i32, i32) {
    %c0_i32 = arith.constant 0 : i32
    %c0_i32_0 = arith.constant 0 : i32
    %c0_i32_1 = arith.constant 0 : i32
    return %c0_i32, %c0_i32_0 : i32, i32
  }
  func.func @transform_1(%arg0: i32) -> (i32, i32) {
    %c0_i32 = arith.constant 0 : i32
    %c0_i32_0 = arith.constant 0 : i32
    %c0_i32_1 = arith.constant 0 : i32
    return %c0_i32, %c0_i32_0 : i32, i32
  }
  func.func @transform_2(%arg0: i32) -> (i32, i32) {
    %c0_i32 = arith.constant 0 : i32
    %c0_i32_0 = arith.constant 0 : i32
    return %c0_i32, %arg0 : i32, i32
  }
  func.func @transform_3(%arg0: i32) -> (i32, i32) {
    %c0_i32 = arith.constant 0 : i32
    %c0_i32_0 = arith.constant 0 : i32
    return %c0_i32, %arg0 : i32, i32
  }
}

module attributes {stable_mosaic.version = 11 : i64} {
  func.func @conv_gemm_kernel(%arg0: i32, %arg1: memref<64x512xbf16, #tpu.memory_space<vmem>>, %arg2: memref<64x1xf32, #tpu.memory_space<vmem>>, %arg3: memref<512x128xbf16, #tpu.memory_space<vmem>>, %arg4: memref<64x128xf32, #tpu.memory_space<vmem>>) attributes {dimension_semantics = [#tpu.dimension_semantics<parallel>], iteration_bounds = array<i64: 1>, scalar_prefetch = 0 : i64, scratch_operands = 0 : i64, tpu.core_type = #tpu.core_type<tc>, window_params = [{pipeline_mode = #tpu.pipeline_mode<synchronous>, transform_indices = @transform_0, window_bounds = array<i64: 64, 512>}, {pipeline_mode = #tpu.pipeline_mode<synchronous>, transform_indices = @transform_1, window_bounds = array<i64: 64, 1>}, {transform_indices = @transform_2, window_bounds = array<i64: 512, 128>}, {transform_indices = @transform_3, window_bounds = array<i64: 64, 128>}]} {
    %c0 = arith.constant 0 : index
    %c0_0 = arith.constant 0 : index
    %0 = vector.load %arg1[%c0, %c0_0] : memref<64x512xbf16, #tpu.memory_space<vmem>>, vector<64x512xbf16>
    %c0_1 = arith.constant 0 : index
    %c0_2 = arith.constant 0 : index
    %1 = vector.load %arg3[%c0_1, %c0_2] : memref<512x128xbf16, #tpu.memory_space<vmem>>, vector<512x128xbf16>
    %cst = arith.constant dense<0.000000e+00> : vector<64x128xf32>
    %2 = tpu.matmul %0, %1, %cst {dimension_numbers = #tpu.dot_dimension_numbers<[1], [0], [0], [1], [0, 0, 1, 1], [], []>} : vector<64x512xbf16>, vector<512x128xbf16>, vector<64x128xf32> -> vector<64x128xf32>
    %c0_3 = arith.constant 0 : index
    %c0_4 = arith.constant 0 : index
    %3 = vector.load %arg2[%c0_3, %c0_4] : memref<64x1xf32, #tpu.memory_space<vmem>>, vector<64x1xf32>
    %4 = vector.broadcast %3 : vector<64x1xf32> to vector<64x128xf32>
    %5 = arith.addf %2, %4 : vector<64x128xf32>
    %cst_5 = arith.constant 0.000000e+00 : f32
    %6 = vector.broadcast %cst_5 : f32 to vector<64x128xf32>
    %7 = arith.maximumf %5, %6 : vector<64x128xf32>
    %c0_6 = arith.constant 0 : index
    %c0_7 = arith.constant 0 : index
    %8 = vector.load %arg4[%c0_6, %c0_7] : memref<64x128xf32, #tpu.memory_space<vmem>>, vector<64x128xf32>
    tpu.vector_store %arg4[%c0_6, %c0_7], %7 {strides = array<i32>} : memref<64x128xf32, #tpu.memory_space<vmem>>, vector<64x128xf32>,
    return
  }
  func.func @transform_0(%arg0: i32) -> (i32, i32) {
    %c0_i32 = arith.constant 0 : i32
    %c0_i32_0 = arith.constant 0 : i32
    %c0_i32_1 = arith.constant 0 : i32
    return %c0_i32, %c0_i32_0 : i32, i32
  }
  func.func @transform_1(%arg0: i32) -> (i32, i32) {
    %c0_i32 = arith.constant 0 : i32
    %c0_i32_0 = arith.constant 0 : i32
    %c0_i32_1 = arith.constant 0 : i32
    return %c0_i32, %c0_i32_0 : i32, i32
  }
  func.func @transform_2(%arg0: i32) -> (i32, i32) {
    %c0_i32 = arith.constant 0 : i32
    %c0_i32_0 = arith.constant 0 : i32
    return %c0_i32, %arg0 : i32, i32
  }
  func.func @transform_3(%arg0: i32) -> (i32, i32) {
    %c0_i32 = arith.constant 0 : i32
    %c0_i32_0 = arith.constant 0 : i32
    return %c0_i32, %arg0 : i32, i32
  }
}

</mosaic_0001>

<bundles_post_ra>
// kernel: _lambda_.4
= control target key start
LH: loop header
LB: loop body
LE: loop exit
PB: predicated region body
PF: predicated region fallthrough
CT: control target
= control target key end

     0   :  { %s570_s12 = smov 0   ;;  %s572_s13 = smov 0   ;;  %s654_s0 = inlined_call_operand.vmem [shape: bf16[8,48], index: 0, kind: input, shape index: {}]   ;;  %s655_s1 = inlined_call_operand.vmem [shape: f32[8,1], index: 1, kind: input, shape index: {}]   ;;  %s656_s2 = inlined_call_operand.vmem [shape: bf16[48,2048], index: 2, kind: input, shape index: {}]   ;;  %s657_s3 = inlined_call_operand.vmem [shape: f32[8,2048], index: 3, kind: output, shape index: {}]  }
   0x1   :  { %s574_s14 = smov 0  }
   0x2 LB: > { %s421_s15 = sadd.s32 4294967295, %s547_s14   ;;  %s587_s16 = sadd.s32 1, %s547_s14   ;;  %s547_s14 = sphi %s574_s14, %s660_s14   ;;  %s543_s13 = sphi %s572_s13, %s659_s13   ;;  %s539_s12 = sphi %s570_s12, %s658_s12  }
   0x3   : > { %s59_s17 = ssub.s32 %s547_s14, %s587_s16  ;;  %s62_s18 = sadd.s32 1, %s543_s13 }
   0x4   : > { %p60_p0 = scmp.eq.s32.totalorder %s59_s17, 0  ;;  %p69_p1 = scmp.ne.s32.totalorder %s543_s13, %s539_s12 }
   0x5   : > { %p70_p2 = scmp.eq.s32.totalorder %s547_s14, 0  ;;  %p424_p4 = scmp.ge.s32.totalorder %s547_s14, 4 }
   0x6   : > { %s596_s19 = scalar_select %p60_p0, %s543_s13, %s62_s18  }
   0x7   : > { %p71_p3 = por %p70_p2, %p69_p1  ;;  %127 = sbr.rel (%p424_p4) target bundleno = 28 (0x1c), region = 24 }
   0xc   : > { %130 = sbr.rel (!%p71_p3) target bundleno = 28 (0x1c), region = 28  ;;  %s132_s20 = sand.u32 (%p71_p3), 1, %s543_s13  }
   0xd   : > { %s484_s21 = sshll.u32 (%p71_p3), %s547_s14, 4  ;;  %s497_s22 = smul.u32 (%p71_p3), 96, %s132_s20 }
   0xe   : > { %s137_s25 = scalar_lea.vmem (%p71_p3), %s656_s2, %s484_s21 }
   0xf   : > { %v150_v0 = vld [vmem:[%s137_s25] sm:$0xff] (%p71_p3)  ;;  %v152_v1 = vld [vmem:[%s137_s25 + $0x8] sm:$0xff] (%p71_p3)  ;;  %s134_s26 = scalar_lea.vmem (%p71_p3), [#allocation2], %s497_s22 }
  0x10   : > { %v154_v2 = vld [vmem:[%s137_s25 + $0x40] sm:$0xff] (%p71_p3)  ;;  %151 = vst [vmem:[%s134_s26] sm:$0xff] (%p71_p3), %v150_v0  ;;  %v156_v3 = vld [vmem:[%s137_s25 + $0x48] sm:$0xff] (%p71_p3) }
  0x11   : > { %153 = vst [vmem:[%s134_s26 + $0x8] sm:$0xff] %v152_v1  ;;  %v158_v4 = vld [vmem:[%s137_s25 + $0x80] sm:$0xff]  ;;  %v160_v5 = vld [vmem:[%s137_s25 + $0x88] sm:$0xff] }
  0x12   : > { %155 = vst [vmem:[%s134_s26 + $0x10] sm:$0xff] %v154_v2  ;;  %v162_v6 = vld [vmem:[%s137_s25 + $0xc0] sm:$0xff]  ;;  %v164_v7 = vld [vmem:[%s137_s25 + $0xc8] sm:$0xff] }
  0x13   : > { %157 = vst [vmem:[%s134_s26 + $0x18] sm:$0xff] %v156_v3  ;;  %v166_v8 = vld [vmem:[%s137_s25 + $0x100] sm:$0xff]  ;;  %v168_v9 = vld [vmem:[%s137_s25 + $0x108] sm:$0xff] }
  0x14   : > { %159 = vst [vmem:[%s134_s26 + $0x20] sm:$0xff] %v158_v4  ;;  %v170_v10 = vld [vmem:[%s137_s25 + $0x140] sm:$0xff]  ;;  %v172_v11 = vld [vmem:[%s137_s25 + $0x148] sm:$0xff] }
  0x15   : > { %161 = vst [vmem:[%s134_s26 + $0x28] sm:$0xff] %v160_v5 }
  0x16   : > { %163 = vst [vmem:[%s134_s26 + $0x30] sm:$0xff] %v162_v6 }
  0x17   : > { %165 = vst [vmem:[%s134_s26 + $0x38] sm:$0xff] %v164_v7 }
  0x18   : > { %167 = vst [vmem:[%s134_s26 + $0x40] sm:$0xff] %v166_v8 }
  0x19   : > { %169 = vst [vmem:[%s134_s26 + $0x48] sm:$0xff] %v168_v9 }
  0x1a   : > { %171 = vst [vmem:[%s134_s26 + $0x50] sm:$0xff] %v170_v10 }
  0x1b   : > { %173 = vst [vmem:[%s134_s26 + $0x58] sm:$0xff] %v172_v11 }
  0x1c PF: > { %p427_p5 = scmp.ge.s32.totalorder %s547_s14, 1  ;;  %p178_p6 = scmp.lt.s32.totalorder %s547_s14, 5 }
  0x1e   : > { %p179_p7 = pnand %p427_p5, %p178_p6 }
  0x1f   : > { %s185_s27 = sand.u32 (!%p179_p7), 1, %s539_s12   ;;  %s428_s7 = sshll.u32 (!%p179_p7), %s421_s15, 2 }
  0x20   : > { %182 = sbr.rel (%p179_p7) target bundleno = 193 (0xc1), region = 51  ;;  %p210_p8 = scmp.lt.s32.totalorder (!%p179_p7), %s428_s7, 15 }
  0x21   : > { %s498_s30 = smul.u32 (!%p179_p7), 96, %s185_s27 }
  0x23   : > { %s610_s4 = scalar_lea.vmem (!%p179_p7), [#allocation2], %s498_s30 }
  0x25   : > { %v229_v12 = vld [vmem:[%s655_s1] sm:$0xff]  ;;  %v549_v13 = vmov 0   ;;  %v495_v15 = vld [vmem:[%s610_s4 + $0x4c] sm:$0xf0]  ;;  %v466_v18 = vld [vmem:[%s610_s4 + $0x50] sm:$0xf0] }
  0x26   : > { %524 = vset.pattern.permute.xlu0 %v549_v13  ;;  %v464_v14 = vld [vmem:[%s610_s4 + $0x40] sm:$0xf]  ;;  %v493_v16 = vld [vmem:[%s610_s4 + $0x44] sm:$0xf]  ;;  %v472_v19 = vld [vmem:[%s610_s4 + $0x48] sm:$0xf] }
  0x27   : > { %232 = vperm.xlu0 %524, %v229_v12   ;;  %v465_v17 = vor.u32 %v495_v15, %v464_v14  ;;  %v496_v20 = vld [vmem:[%s610_s4 + $0x54] sm:$0xf0]  ;;  %v469_v21 = vor.u32 %v493_v16, %v466_v18  ;;  %v494_v23 = vld [vmem:[%s610_s4 + $0x4c] sm:$0xf]  ;;  %v474_v24 = vld [vmem:[%s610_s4 + $0x58] sm:$0xf0] }
  0x28   : > { %v473_v22 = vor.u32 %v496_v20, %v472_v19  ;;  %v448_v25 = vld [vmem:[%s610_s4 + $0x20] sm:$0xf]  ;;  %v477_v26 = vor.u32 %v494_v23, %v474_v24  ;;  %v491_v27 = vld [vmem:[%s610_s4 + $0x2c] sm:$0xf0]  ;;  %v489_v28 = vld [vmem:[%s610_s4 + $0x24] sm:$0xf] }
  0x29   : > { %304 = vmatpush.bf16.msra.mxu0 %v465_v17  ;;  %v450_v29 = vld [vmem:[%s610_s4 + $0x30] sm:$0xf0]  ;;  %317 = vmatpush.bf16.msra.mxu1 %v469_v21  ;;  %v449_v30 = vor.u32 %v491_v27, %v448_v25  ;;  %v456_v32 = vld [vmem:[%s610_s4 + $0x28] sm:$0xf]  ;;  %v492_v33 = vld [vmem:[%s610_s4 + $0x34] sm:$0xf0] }
  0x2a   : > { %330 = vmatpush.bf16.msra.mxu2 %v473_v22  ;;  %v453_v31 = vor.u32 %v489_v28, %v450_v29  ;;  %v490_v34 = vld [vmem:[%s610_s4 + $0x2c] sm:$0xf]  ;;  %343 = vmatpush.bf16.msra.mxu3 %v477_v26  ;;  %v457_v35 = vor.u32 %v492_v33, %v456_v32  ;;  %v458_v36 = vld [vmem:[%s610_s4 + $0x38] sm:$0xf0]  ;;  %v432_v37 = vld [vmem:[%s610_s4] sm:$0xf] }
  0x2b   : > { %v487_v38 = vld [vmem:[%s610_s4 + $0xc] sm:$0xf0]  ;;  %v461_v39 = vor.u32 %v490_v34, %v458_v36  ;;  %v485_v40 = vld [vmem:[%s610_s4 + $0x4] sm:$0xf]  ;;  %v434_v41 = vld [vmem:[%s610_s4 + $0x10] sm:$0xf0] }
  0x2c   : > { %v440_v42 = vld [vmem:[%s610_s4 + $0x8] sm:$0xf]  ;;  %v433_v43 = vor.u32 %v487_v38, %v432_v37  ;;  %v488_v44 = vld [vmem:[%s610_s4 + $0x14] sm:$0xf0]  ;;  %v486_v45 = vld [vmem:[%s610_s4 + $0xc] sm:$0xf]  ;;  %v437_v47 = vor.u32 %v485_v40, %v434_v41 }
  0x2d   : > { %305 = vmatpush.bf16.msra.mxu0 %v449_v30  ;;  %v442_v46 = vld [vmem:[%s610_s4 + $0x18] sm:$0xf0]  ;;  %318 = vmatpush.bf16.msra.mxu1 %v453_v31  ;;  %v441_v48 = vor.u32 %v488_v44, %v440_v42  ;;  %v216_v50 = vld [vmem:[%s654_s0] sm:$0xf]  ;;  %vm295_vm0 = vcmask 392192   ;;  %s662_s7 = smov (!%p210_p8, %s428_s7), 15 }
  0x2e   : > { %331 = vmatpush.bf16.msra.mxu2 %v457_v35  ;;  %344 = vmatpush.bf16.msra.mxu3 %v461_v39  ;;  %v445_v49 = vor.u32 %v486_v45, %v442_v46  ;;  %s429_s8 = sshll.u32 %s662_s7, 3 }
  0x2f   : > { %s213_s11 = scalar_lea.vmem %s657_s3, %s429_s8 }
  0x31   : > { %306 = vmatpush.bf16.msra.mxu0 %v433_v43  ;;  %319 = vmatpush.bf16.msra.mxu1 %v437_v47 }
  0x32   : > { %332 = vmatpush.bf16.msra.mxu2 %v441_v48  ;;  %345 = vmatpush.bf16.msra.mxu3 %v445_v49 }
  0x34   : > { %478 = vmatmul.msk.bf16.vlgmr.msra.gmra.mxu0 %vm295_vm0, %v216_v50  ;;  %479 = vmatmul.msk.bf16.vlgmr.msra.gmra.mxu1 %vm295_vm0, %v216_v50 }
  0x35   : > { %480 = vmatmul.msk.bf16.vlgmr.msra.gmra.mxu2 %vm295_vm0, %v216_v50  ;;  %481 = vmatmul.msk.bf16.vlgmr.msra.gmra.mxu3 %vm295_vm0, %v216_v50 }
  0x99   : > { %v233_v51 = vpop.permute.xlu0 %232 }
  0xb1   : > { %v308_v52 = vpop.f32.mrf.mxu0  ;;  %v321_v53 = vpop.f32.mrf.mxu1 }
  0xb2   : > { %v309_v54 = vadd.f32 %v308_v52, %v233_v51  ;;  %v322_v55 = vadd.f32 %v321_v53, %v233_v51 }
  0xb4   : > { %v351_v56 = vmax.f32 %v309_v54, 0.0  ;;  %v352_v57 = vmax.f32 %v322_v55, 0.0 }
  0xb6   : > { %355 = vst [vmem:[%s213_s11] sm:$0xff] %v351_v56 }
  0xb7   : > { %356 = vst [vmem:[%s213_s11 + $0x8] sm:$0xff] %v352_v57 }
  0xb8   : > { %v334_v58 = vpop.f32.mrf.mxu2  ;;  %v347_v60 = vpop.f32.mrf.mxu3 }
  0xb9   : > { %v335_v59 = vadd.f32 %v334_v58, %v233_v51  ;;  %v310_v61 = vpop.f32.mrf.mxu0  ;;  %v348_v62 = vadd.f32 %v347_v60, %v233_v51  ;;  %v323_v63 = vpop.f32.mrf.mxu1 }
  0xbb   : > { %v353_v0 = vmax.f32 %v335_v59, 0.0  ;;  %v354_v1 = vmax.f32 %v348_v62, 0.0 }
  0xbd   : > { %357 = vst [vmem:[%s213_s11 + $0x10] sm:$0xff] %v353_v0 }
  0xbe   : > { %358 = vst [vmem:[%s213_s11 + $0x18] sm:$0xff] %v354_v1 }
  0xc0   : > { %v336_v2 = vpop.f32.mrf.mxu2  ;;  %v349_v3 = vpop.f32.mrf.mxu3 }
  0xc1 PF: > { %p10_p9 = scmp.ge.s32.totalorder %s587_s16, 6   ;;  %s658_s12 = smov %s543_s13 }
  0xc2   : > { %s659_s13 = smov %s596_s19  ;;  %s660_s14 = smov %s587_s16 }
  0xc3   :  { %12 = sbr.rel (!%p10_p9) target bundleno = 2 (0x2), region = 90 }

// kernel: _lambda_.5
= control target key start
LH: loop header
LB: loop body
LE: loop exit
PB: predicated region body
PF: predicated region fallthrough
CT: control target
= control target key end

     0   :  { %s715_s2 = inlined_call_operand.vmem [shape: bf16[128,512], index: 2, kind: input, shape index: {}]   ;;  %s716_s1 = inlined_call_operand.vmem [shape: f32[16,1], index: 1, kind: input, shape index: {}]   ;;  %s717_s0 = inlined_call_operand.vmem [shape: bf16[16,128], index: 0, kind: input, shape index: {}]   ;;  %s718_s3 = inlined_call_operand.vmem [shape: f32[16,512], index: 3, kind: output, shape index: {}]  }
   0x1   :  { %v420_v0 = vld [vmem:[%s715_s2 + $0xe0] sm:$0xf]  ;;  %v465_v1 = vld [vmem:[%s715_s2 + $0xec] sm:$0xf0]  ;;  %v463_v2 = vld [vmem:[%s715_s2 + $0xe4] sm:$0xf] }
   0x2   :  { %v421_v3 = vor.u32 %v465_v1, %v420_v0  ;;  %v422_v4 = vld [vmem:[%s715_s2 + $0xf0] sm:$0xf0]  ;;  %v428_v5 = vld [vmem:[%s715_s2 + $0xe8] sm:$0xf]  ;;  %v466_v6 = vld [vmem:[%s715_s2 + $0xf4] sm:$0xf0] }
   0x3   :  { %v425_v7 = vor.u32 %v463_v2, %v422_v4  ;;  %v429_v8 = vor.u32 %v466_v6, %v428_v5  ;;  %v464_v9 = vld [vmem:[%s715_s2 + $0xec] sm:$0xf]  ;;  %v430_v10 = vld [vmem:[%s715_s2 + $0xf8] sm:$0xf0]  ;;  %v404_v11 = vld [vmem:[%s715_s2 + $0xc0] sm:$0xf] }
   0x4   :  { %226 = vmatpush.bf16.msra.mxu0 %v421_v3  ;;  %v433_v12 = vor.u32 %v464_v9, %v430_v10  ;;  %v461_v13 = vld [vmem:[%s715_s2 + $0xcc] sm:$0xf0]  ;;  %v459_v14 = vld [vmem:[%s715_s2 + $0xc4] sm:$0xf]  ;;  %v406_v15 = vld [vmem:[%s715_s2 + $0xd0] sm:$0xf0] }
   0x5   :  { %240 = vmatpush.bf16.msra.mxu1 %v425_v7  ;;  %254 = vmatpush.bf16.msra.mxu2 %v429_v8  ;;  %v405_v16 = vor.u32 %v461_v13, %v404_v11  ;;  %v409_v17 = vor.u32 %v459_v14, %v406_v15  ;;  %v412_v18 = vld [vmem:[%s715_s2 + $0xc8] sm:$0xf]  ;;  %v462_v19 = vld [vmem:[%s715_s2 + $0xd4] sm:$0xf0]  ;;  %v460_v20 = vld [vmem:[%s715_s2 + $0xcc] sm:$0xf] }
   0x6   :  { %268 = vmatpush.bf16.msra.mxu3 %v433_v12  ;;  %v413_v21 = vor.u32 %v462_v19, %v412_v18  ;;  %v414_v22 = vld [vmem:[%s715_s2 + $0xd8] sm:$0xf0]  ;;  %v388_v23 = vld [vmem:[%s715_s2 + $0xa0] sm:$0xf]  ;;  %v457_v24 = vld [vmem:[%s715_s2 + $0xac] sm:$0xf0] }
   0x7   :  { %v417_v25 = vor.u32 %v460_v20, %v414_v22  ;;  %v455_v26 = vld [vmem:[%s715_s2 + $0xa4] sm:$0xf]  ;;  %v390_v27 = vld [vmem:[%s715_s2 + $0xb0] sm:$0xf0]  ;;  %v396_v28 = vld [vmem:[%s715_s2 + $0xa8] sm:$0xf]  ;;  %v389_v29 = vor.u32 %v457_v24, %v388_v23 }
   0x8   :  { %227 = vmatpush.bf16.msra.mxu0 %v405_v16  ;;  %v458_v30 = vld [vmem:[%s715_s2 + $0xb4] sm:$0xf0]  ;;  %v456_v31 = vld [vmem:[%s715_s2 + $0xac] sm:$0xf]  ;;  %v398_v32 = vld [vmem:[%s715_s2 + $0xb8] sm:$0xf0]  ;;  %v393_v33 = vor.u32 %v455_v26, %v390_v27 }
   0x9   :  { %241 = vmatpush.bf16.msra.mxu1 %v409_v17  ;;  %255 = vmatpush.bf16.msra.mxu2 %v413_v21  ;;  %v397_v34 = vor.u32 %v458_v30, %v396_v28  ;;  %v372_v35 = vld [vmem:[%s715_s2 + $0x80] sm:$0xf]  ;;  %v453_v36 = vld [vmem:[%s715_s2 + $0x8c] sm:$0xf0]  ;;  %v451_v37 = vld [vmem:[%s715_s2 + $0x84] sm:$0xf]  ;;  %v401_v38 = vor.u32 %v456_v31, %v398_v32 }
   0xa   :  { %269 = vmatpush.bf16.msra.mxu3 %v417_v25  ;;  %v374_v39 = vld [vmem:[%s715_s2 + $0x90] sm:$0xf0]  ;;  %v380_v40 = vld [vmem:[%s715_s2 + $0x88] sm:$0xf]  ;;  %v454_v41 = vld [vmem:[%s715_s2 + $0x94] sm:$0xf0]  ;;  %v373_v44 = vor.u32 %v453_v36, %v372_v35 }
   0xb   :  { %v452_v42 = vld [vmem:[%s715_s2 + $0x8c] sm:$0xf]  ;;  %v382_v43 = vld [vmem:[%s715_s2 + $0x98] sm:$0xf0]  ;;  %v377_v45 = vor.u32 %v451_v37, %v374_v39  ;;  %v381_v46 = vor.u32 %v454_v41, %v380_v40  ;;  %v356_v47 = vld [vmem:[%s715_s2 + $0x60] sm:$0xf] }
   0xc   :  { %228 = vmatpush.bf16.msra.mxu0 %v389_v29  ;;  %v449_v48 = vld [vmem:[%s715_s2 + $0x6c] sm:$0xf0]  ;;  %v447_v49 = vld [vmem:[%s715_s2 + $0x64] sm:$0xf]  ;;  %v385_v50 = vor.u32 %v452_v42, %v382_v43  ;;  %v358_v51 = vld [vmem:[%s715_s2 + $0x70] sm:$0xf0] }
   0xd   :  { %242 = vmatpush.bf16.msra.mxu1 %v393_v33  ;;  %256 = vmatpush.bf16.msra.mxu2 %v397_v34  ;;  %v364_v52 = vld [vmem:[%s715_s2 + $0x68] sm:$0xf]  ;;  %v450_v53 = vld [vmem:[%s715_s2 + $0x74] sm:$0xf0]  ;;  %v448_v54 = vld [vmem:[%s715_s2 + $0x6c] sm:$0xf]  ;;  %v357_v56 = vor.u32 %v449_v48, %v356_v47  ;;  %v361_v57 = vor.u32 %v447_v49, %v358_v51 }
   0xe   :  { %270 = vmatpush.bf16.msra.mxu3 %v401_v38  ;;  %v366_v55 = vld [vmem:[%s715_s2 + $0x78] sm:$0xf0]  ;;  %v365_v58 = vor.u32 %v450_v53, %v364_v52  ;;  %v340_v59 = vld [vmem:[%s715_s2 + $0x40] sm:$0xf]  ;;  %v445_v60 = vld [vmem:[%s715_s2 + $0x4c] sm:$0xf0] }
   0xf   :  { %v443_v61 = vld [vmem:[%s715_s2 + $0x44] sm:$0xf]  ;;  %v369_v62 = vor.u32 %v448_v54, %v366_v55  ;;  %v342_v63 = vld [vmem:[%s715_s2 + $0x50] sm:$0xf0]  ;;  %v348_v0 = vld [vmem:[%s715_s2 + $0x48] sm:$0xf]  ;;  %v341_v4 = vor.u32 %v445_v60, %v340_v59 }
  0x10   :  { %229 = vmatpush.bf16.msra.mxu0 %v373_v44  ;;  %v446_v1 = vld [vmem:[%s715_s2 + $0x54] sm:$0xf0]  ;;  %v444_v2 = vld [vmem:[%s715_s2 + $0x4c] sm:$0xf]  ;;  %v350_v3 = vld [vmem:[%s715_s2 + $0x58] sm:$0xf0]  ;;  %v345_v6 = vor.u32 %v443_v61, %v342_v63 }
  0x11   :  { %243 = vmatpush.bf16.msra.mxu1 %v377_v45  ;;  %257 = vmatpush.bf16.msra.mxu2 %v381_v46  ;;  %v324_v5 = vld [vmem:[%s715_s2 + $0x20] sm:$0xf]  ;;  %v349_v7 = vor.u32 %v446_v1, %v348_v0  ;;  %v441_v8 = vld [vmem:[%s715_s2 + $0x2c] sm:$0xf0]  ;;  %v439_v9 = vld [vmem:[%s715_s2 + $0x24] sm:$0xf]  ;;  %v353_v11 = vor.u32 %v444_v2, %v350_v3 }
  0x12   :  { %271 = vmatpush.bf16.msra.mxu3 %v385_v50  ;;  %v326_v10 = vld [vmem:[%s715_s2 + $0x30] sm:$0xf0]  ;;  %v332_v12 = vld [vmem:[%s715_s2 + $0x28] sm:$0xf]  ;;  %v442_v13 = vld [vmem:[%s715_s2 + $0x34] sm:$0xf0]  ;;  %v325_v18 = vor.u32 %v441_v8, %v324_v5 }
  0x13   :  { %v48_v14 = vld [vmem:[%s716_s1] sm:$0xff]  ;;  %v440_v15 = vld [vmem:[%s715_s2 + $0x2c] sm:$0xf]  ;;  %v334_v16 = vld [vmem:[%s715_s2 + $0x38] sm:$0xf0]  ;;  %v469_v17 = vmov 0   ;;  %v329_v19 = vor.u32 %v439_v9, %v326_v10  ;;  %v333_v20 = vor.u32 %v442_v13, %v332_v12 }
  0x14   :  { %230 = vmatpush.bf16.msra.mxu0 %v357_v56  ;;  %468 = vset.pattern.permute.xlu0 %v469_v17  ;;  %v308_v21 = vld [vmem:[%s715_s2] sm:$0xf]  ;;  %v437_v22 = vld [vmem:[%s715_s2 + $0xc] sm:$0xf0]  ;;  %v435_v23 = vld [vmem:[%s715_s2 + $0x4] sm:$0xf]  ;;  %v337_v24 = vor.u32 %v440_v15, %v334_v16 }
  0x15   :  { %244 = vmatpush.bf16.msra.mxu1 %v361_v57  ;;  %258 = vmatpush.bf16.msra.mxu2 %v365_v58  ;;  %v310_v25 = vld [vmem:[%s715_s2 + $0x10] sm:$0xf0]  ;;  %v316_v26 = vld [vmem:[%s715_s2 + $0x8] sm:$0xf]  ;;  %v438_v27 = vld [vmem:[%s715_s2 + $0x14] sm:$0xf0]  ;;  %v309_v30 = vor.u32 %v437_v22, %v308_v21 }
  0x16   :  { %272 = vmatpush.bf16.msra.mxu3 %v369_v62  ;;  %52 = vperm.xlu0 %468, %v48_v14   ;;  %v436_v28 = vld [vmem:[%s715_s2 + $0xc] sm:$0xf]  ;;  %v318_v29 = vld [vmem:[%s715_s2 + $0x18] sm:$0xf0]  ;;  %v313_v31 = vor.u32 %v435_v23, %v310_v25  ;;  %v317_v32 = vor.u32 %v438_v27, %v316_v26  ;;  %v434_v35 = vld [vmem:[%s717_s0] sm:$0xff] }
  0x17   :  { %v49_v33 = vld [vmem:[%s716_s1 + $0x8] sm:$0xff]  ;;  %v321_v34 = vor.u32 %v436_v28, %v318_v29 }
  0x18   :  { %231 = vmatpush.bf16.msra.mxu0 %v341_v4 }
  0x19   :  { %245 = vmatpush.bf16.msra.mxu1 %v345_v6  ;;  %259 = vmatpush.bf16.msra.mxu2 %v349_v7 }
  0x1a   :  { %273 = vmatpush.bf16.msra.mxu3 %v353_v11 }
  0x1c   :  { %232 = vmatpush.bf16.msra.mxu0 %v325_v18 }
  0x1d   :  { %246 = vmatpush.bf16.msra.mxu1 %v329_v19  ;;  %260 = vmatpush.bf16.msra.mxu2 %v333_v20 }
  0x1e   :  { %274 = vmatpush.bf16.msra.mxu3 %v337_v24  ;;  %57 = vperm.xlu0 %468, %v49_v33  }
  0x20   :  { %233 = vmatpush.bf16.msra.mxu0 %v309_v30 }
  0x21   :  { %247 = vmatpush.bf16.msra.mxu1 %v313_v31  ;;  %261 = vmatpush.bf16.msra.mxu2 %v317_v32 }
  0x22   :  { %275 = vmatpush.bf16.msra.mxu3 %v321_v34 }
  0x23   :  { %234 = vmatmul.bf16.vlgmr.msra.gmra.mxu0 %v434_v35 }
  0x24   :  { %248 = vmatmul.bf16.vlgmr.msra.gmra.mxu1 %v434_v35  ;;  %262 = vmatmul.bf16.vlgmr.msra.gmra.mxu2 %v434_v35 }
  0x25   :  { %276 = vmatmul.bf16.vlgmr.msra.gmra.mxu3 %v434_v35 }
  0x88   :  { %v53_v36 = vpop.permute.xlu0 %52 }
  0x90   :  { %v58_v43 = vpop.permute.xlu0 %57 }
  0xa0   :  { %v235_v37 = vpop.f32.mrf.mxu0 }
  0xa1   :  { %v236_v38 = vadd.f32 %v235_v37, %v53_v36  ;;  %v249_v39 = vpop.f32.mrf.mxu1 }
  0xa2   :  { %v250_v40 = vadd.f32 %v249_v39, %v53_v36 }
  0xa3   :  { %v282_v41 = vmax.f32 %v236_v38, 0.0 }
  0xa4   :  { %v283_v42 = vmax.f32 %v250_v40, 0.0 }
  0xa5   :  { %290 = vst [vmem:[%s718_s3] sm:$0xff] %v282_v41 }
  0xa6   :  { %291 = vst [vmem:[%s718_s3 + $0x8] sm:$0xff] %v283_v42 }
  0xa7   :  { %v263_v44 = vpop.f32.mrf.mxu2 }
  0xa8   :  { %v264_v45 = vadd.f32 %v263_v44, %v53_v36  ;;  %v277_v46 = vpop.f32.mrf.mxu3  ;;  %v237_v47 = vpop.f32.mrf.mxu0 }
  0xa9   :  { %v278_v48 = vadd.f32 %v277_v46, %v53_v36  ;;  %v238_v49 = vadd.f32 %v237_v47, %v58_v43  ;;  %v251_v50 = vpop.f32.mrf.mxu1 }
  0xaa   :  { %v284_v51 = vmax.f32 %v264_v45, 0.0  ;;  %v252_v52 = vadd.f32 %v251_v50, %v58_v43 }
  0xab   :  { %v285_v53 = vmax.f32 %v278_v48, 0.0  ;;  %v286_v54 = vmax.f32 %v238_v49, 0.0 }
  0xac   :  { %292 = vst [vmem:[%s718_s3 + $0x10] sm:$0xff] %v284_v51  ;;  %v287_v55 = vmax.f32 %v252_v52, 0.0 }
  0xad   :  { %293 = vst [vmem:[%s718_s3 + $0x18] sm:$0xff] %v285_v53 }
  0xae   :  { %294 = vst [vmem:[%s718_s3 + $0x20] sm:$0xff] %v286_v54 }
  0xaf   :  { %295 = vst [vmem:[%s718_s3 + $0x28] sm:$0xff] %v287_v55  ;;  %v265_v56 = vpop.f32.mrf.mxu2 }
  0xb0   :  { %v266_v57 = vadd.f32 %v265_v56, %v58_v43  ;;  %v279_v58 = vpop.f32.mrf.mxu3 }
  0xb1   :  { %v280_v59 = vadd.f32 %v279_v58, %v58_v43 }
  0xb2   :  { %v288_v60 = vmax.f32 %v266_v57, 0.0 }
  0xb3   :  { %v289_v61 = vmax.f32 %v280_v59, 0.0 }
  0xb4   :  { %296 = vst [vmem:[%s718_s3 + $0x30] sm:$0xff] %v288_v60 }
  0xb5   :  { %297 = vst [vmem:[%s718_s3 + $0x38] sm:$0xff] %v289_v61 }

// kernel: _lambda_.6
= control target key start
LH: loop header
LB: loop body
LE: loop exit
PB: predicated region body
PF: predicated region fallthrough
CT: control target
= control target key end

     0   :  { %v359_v4 = vmov 0   ;;  %s476_s2 = inlined_call_operand.vmem [shape: bf16[256,128], index: 2, kind: input, shape index: {}]   ;;  %s477_s1 = inlined_call_operand.vmem [shape: f32[32,1], index: 1, kind: input, shape index: {}]   ;;  %s478_s0 = inlined_call_operand.vmem [shape: bf16[32,256], index: 0, kind: input, shape index: {}]   ;;  %s479_s3 = inlined_call_operand.vmem [shape: f32[32,128], index: 3, kind: output, shape index: {}]  }
   0x1   :  { %v331_v0 = vld [vmem:[%s476_s2 + $0x38] sm:$0xff]  ;;  %v330_v2 = vld [vmem:[%s476_s2 + $0x30] sm:$0xff]  ;;  %358 = vset.pattern.permute.xlu1 %v359_v4  ;;  %357 = vset.pattern.permute.xlu0 %v359_v4  ;;  %v329_v5 = vld [vmem:[%s476_s2 + $0x28] sm:$0xff] }
   0x2   :  { %v339_v1 = vld [vmem:[%s476_s2 + $0x78] sm:$0xff]  ;;  %190 = vmatpush.bf16.msra.mxu0 %v331_v0  ;;  %340 = vmatpush.bf16.msra.mxu2 %v331_v0  ;;  %v338_v3 = vld [vmem:[%s476_s2 + $0x70] sm:$0xff]  ;;  %v337_v6 = vld [vmem:[%s476_s2 + $0x68] sm:$0xff] }
   0x3   :  { %209 = vmatpush.bf16.msra.mxu1 %v339_v1  ;;  %348 = vmatpush.bf16.msra.mxu3 %v339_v1  ;;  %v52_v7 = vld [vmem:[%s477_s1 + $0x10] sm:$0xff]  ;;  %v50_v8 = vld [vmem:[%s477_s1] sm:$0xff]  ;;  %v327_v11 = vld [vmem:[%s476_s2 + $0x18] sm:$0xff] }
   0x4   :  { %66 = vperm.xlu1 %358, %v52_v7   ;;  %56 = vperm.xlu0 %357, %v50_v8   ;;  %v328_v9 = vld [vmem:[%s476_s2 + $0x20] sm:$0xff]  ;;  %v53_v12 = vld [vmem:[%s477_s1 + $0x18] sm:$0xff]  ;;  %v51_v13 = vld [vmem:[%s477_s1 + $0x8] sm:$0xff] }
   0x5   :  { %v336_v10 = vld [vmem:[%s476_s2 + $0x60] sm:$0xff]  ;;  %v335_v14 = vld [vmem:[%s476_s2 + $0x58] sm:$0xff]  ;;  %v326_v15 = vld [vmem:[%s476_s2 + $0x10] sm:$0xff] }
   0x6   :  { %191 = vmatpush.bf16.msra.mxu0 %v330_v2  ;;  %341 = vmatpush.bf16.msra.mxu2 %v330_v2  ;;  %v334_v16 = vld [vmem:[%s476_s2 + $0x50] sm:$0xff]  ;;  %v325_v17 = vld [vmem:[%s476_s2 + $0x8] sm:$0xff]  ;;  %v324_v19 = vld [vmem:[%s476_s2] sm:$0xff] }
   0x7   :  { %210 = vmatpush.bf16.msra.mxu1 %v338_v3  ;;  %349 = vmatpush.bf16.msra.mxu3 %v338_v3  ;;  %v333_v18 = vld [vmem:[%s476_s2 + $0x48] sm:$0xff]  ;;  %v332_v20 = vld [vmem:[%s476_s2 + $0x40] sm:$0xff]  ;;  %v250_v23 = vld [vmem:[%s478_s0 + $0x10] sm:$0xf] }
   0x8   :  { %v242_v21 = vld [vmem:[%s478_s0] sm:$0xf]  ;;  %v321_v22 = vld [vmem:[%s478_s0 + $0x4] sm:$0xf0]  ;;  %v323_v24 = vld [vmem:[%s478_s0 + $0x14] sm:$0xf0] }
   0x9   :  { %v320_v25 = vld [vmem:[%s478_s0 + $0x4] sm:$0xf]  ;;  %v244_v26 = vld [vmem:[%s478_s0 + $0x8] sm:$0xf0]  ;;  %v322_v27 = vld [vmem:[%s478_s0 + $0x14] sm:$0xf]  ;;  %v243_v29 = vor.u32 %v321_v22, %v242_v21  ;;  %v251_v30 = vor.u32 %v323_v24, %v250_v23 }
   0xa   :  { %192 = vmatpush.bf16.msra.mxu0 %v329_v5  ;;  %342 = vmatpush.bf16.msra.mxu2 %v329_v5  ;;  %v252_v28 = vld [vmem:[%s478_s0 + $0x18] sm:$0xf0]  ;;  %v247_v31 = vor.u32 %v320_v25, %v244_v26 }
   0xb   :  { %211 = vmatpush.bf16.msra.mxu1 %v337_v6  ;;  %350 = vmatpush.bf16.msra.mxu3 %v337_v6  ;;  %v255_v32 = vor.u32 %v322_v27, %v252_v28 }
   0xc   :  { %71 = vperm.xlu1 %358, %v53_v12   ;;  %61 = vperm.xlu0 %357, %v51_v13  }
   0xe   :  { %193 = vmatpush.bf16.msra.mxu0 %v328_v9  ;;  %343 = vmatpush.bf16.msra.mxu2 %v328_v9 }
   0xf   :  { %212 = vmatpush.bf16.msra.mxu1 %v336_v10  ;;  %351 = vmatpush.bf16.msra.mxu3 %v336_v10 }
  0x12   :  { %194 = vmatpush.bf16.msra.mxu0 %v327_v11  ;;  %344 = vmatpush.bf16.msra.mxu2 %v327_v11 }
  0x13   :  { %213 = vmatpush.bf16.msra.mxu1 %v335_v14  ;;  %352 = vmatpush.bf16.msra.mxu3 %v335_v14 }
  0x16   :  { %195 = vmatpush.bf16.msra.mxu0 %v326_v15  ;;  %345 = vmatpush.bf16.msra.mxu2 %v326_v15 }
  0x17   :  { %214 = vmatpush.bf16.msra.mxu1 %v334_v16  ;;  %353 = vmatpush.bf16.msra.mxu3 %v334_v16 }
  0x1a   :  { %196 = vmatpush.bf16.msra.mxu0 %v325_v17  ;;  %346 = vmatpush.bf16.msra.mxu2 %v325_v17 }
  0x1b   :  { %215 = vmatpush.bf16.msra.mxu1 %v333_v18  ;;  %354 = vmatpush.bf16.msra.mxu3 %v333_v18 }
  0x1e   :  { %197 = vmatpush.bf16.msra.mxu0 %v324_v19  ;;  %347 = vmatpush.bf16.msra.mxu2 %v324_v19 }
  0x1f   :  { %216 = vmatpush.bf16.msra.mxu1 %v332_v20  ;;  %355 = vmatpush.bf16.msra.mxu3 %v332_v20 }
  0x21   :  { %198 = vmatmul.bf16.vlgmr.msra.gmra.mxu0 %v243_v29  ;;  %203 = vmatmul.bf16.vlgmr.msra.gmra.mxu2 %v251_v30 }
  0x22   :  { %217 = vmatmul.bf16.vlgmr.msra.gmra.mxu1 %v247_v31  ;;  %222 = vmatmul.bf16.vlgmr.msra.gmra.mxu3 %v255_v32 }
  0x76   :  { %v57_v33 = vpop.permute.xlu0 %56  ;;  %v67_v38 = vpop.permute.xlu1 %66 }
  0x7e   :  { %v62_v43 = vpop.permute.xlu0 %61  ;;  %v72_v51 = vpop.permute.xlu1 %71 }
  0x9e   :  { %v199_v34 = vpop.f32.mrf.mxu0 }
  0x9f   :  { %v200_v35 = vadd.f32 %v199_v34, %v57_v33  ;;  %v218_v36 = vpop.f32.mrf.mxu1 }
  0xa1   :  { %v219_v37 = vadd.f32 %v218_v36, %v200_v35 }
  0xa3   :  { %v228_v39 = vmax.f32 %v219_v37, 0.0 }
  0xa4   :  { %v204_v40 = vpop.f32.mrf.mxu2 }
  0xa5   :  { %232 = vst [vmem:[%s479_s3] sm:$0xff] %v228_v39  ;;  %v205_v41 = vadd.f32 %v204_v40, %v67_v38  ;;  %v223_v42 = vpop.f32.mrf.mxu3 }
  0xa6   :  { %v201_v44 = vpop.f32.mrf.mxu0 }
  0xa7   :  { %v224_v45 = vadd.f32 %v223_v42, %v205_v41  ;;  %v202_v46 = vadd.f32 %v201_v44, %v62_v43  ;;  %v220_v47 = vpop.f32.mrf.mxu1 }
  0xa9   :  { %v230_v48 = vmax.f32 %v224_v45, 0.0  ;;  %v221_v49 = vadd.f32 %v220_v47, %v202_v46 }
  0xab   :  { %234 = vst [vmem:[%s479_s3 + $0x10] sm:$0xff] %v230_v48  ;;  %v229_v50 = vmax.f32 %v221_v49, 0.0 }
  0xac   :  { %v206_v52 = vpop.f32.mrf.mxu2 }
  0xad   :  { %233 = vst [vmem:[%s479_s3 + $0x8] sm:$0xff] %v229_v50  ;;  %v207_v53 = vadd.f32 %v206_v52, %v72_v51  ;;  %v225_v54 = vpop.f32.mrf.mxu3 }
  0xaf   :  { %v226_v55 = vadd.f32 %v225_v54, %v207_v53 }
  0xb1   :  { %v231_v56 = vmax.f32 %v226_v55, 0.0 }
  0xb3   :  { %235 = vst [vmem:[%s479_s3 + $0x18] sm:$0xff] %v231_v56 }

// kernel: _lambda_.7
= control target key start
LH: loop header
LB: loop body
LE: loop exit
PB: predicated region body
PF: predicated region fallthrough
CT: control target
= control target key end

     0   :  { %v794_v8 = vmov 0   ;;  %s1055_s2 = inlined_call_operand.vmem [shape: bf16[512,128], index: 2, kind: input, shape index: {}]   ;;  %s1056_s1 = inlined_call_operand.vmem [shape: f32[64,1], index: 1, kind: input, shape index: {}]   ;;  %s1057_s0 = inlined_call_operand.vmem [shape: bf16[64,512], index: 0, kind: input, shape index: {}]   ;;  %s1058_s3 = inlined_call_operand.vmem [shape: f32[64,128], index: 3, kind: output, shape index: {}]  }
   0x1   :  { %v765_v0 = vld [vmem:[%s1055_s2 + $0x38] sm:$0xff]  ;;  %v764_v4 = vld [vmem:[%s1055_s2 + $0x30] sm:$0xff]  ;;  %791 = vset.pattern.permute.xlu0 %v794_v8  ;;  %792 = vset.pattern.permute.xlu1 %v794_v8  ;;  %v763_v9 = vld [vmem:[%s1055_s2 + $0x28] sm:$0xff] }
   0x2   :  { %v773_v1 = vld [vmem:[%s1055_s2 + $0x78] sm:$0xff]  ;;  %414 = vmatpush.bf16.msra.mxu0 %v765_v0  ;;  %v772_v5 = vld [vmem:[%s1055_s2 + $0x70] sm:$0xff]  ;;  %793 = vset.pattern.permute.xlu2 %v794_v8  ;;  %v771_v10 = vld [vmem:[%s1055_s2 + $0x68] sm:$0xff] }
   0x3   :  { %v781_v2 = vld [vmem:[%s1055_s2 + $0xb8] sm:$0xff]  ;;  %443 = vmatpush.bf16.msra.mxu1 %v773_v1  ;;  %v780_v6 = vld [vmem:[%s1055_s2 + $0xb0] sm:$0xff]  ;;  %v779_v11 = vld [vmem:[%s1055_s2 + $0xa8] sm:$0xff] }
   0x4   :  { %v789_v3 = vld [vmem:[%s1055_s2 + $0xf8] sm:$0xff]  ;;  %472 = vmatpush.bf16.msra.mxu2 %v781_v2  ;;  %v788_v7 = vld [vmem:[%s1055_s2 + $0xf0] sm:$0xff]  ;;  %v787_v12 = vld [vmem:[%s1055_s2 + $0xe8] sm:$0xff] }
   0x5   :  { %501 = vmatpush.bf16.msra.mxu3 %v789_v3  ;;  %v762_v13 = vld [vmem:[%s1055_s2 + $0x20] sm:$0xff]  ;;  %v761_v18 = vld [vmem:[%s1055_s2 + $0x18] sm:$0xff]  ;;  %v760_v22 = vld [vmem:[%s1055_s2 + $0x10] sm:$0xff] }
   0x6   :  { %415 = vmatpush.bf16.msra.mxu0 %v764_v4  ;;  %v770_v14 = vld [vmem:[%s1055_s2 + $0x60] sm:$0xff]  ;;  %v769_v19 = vld [vmem:[%s1055_s2 + $0x58] sm:$0xff]  ;;  %v768_v23 = vld [vmem:[%s1055_s2 + $0x50] sm:$0xff] }
   0x7   :  { %444 = vmatpush.bf16.msra.mxu1 %v772_v5  ;;  %v778_v15 = vld [vmem:[%s1055_s2 + $0xa0] sm:$0xff]  ;;  %v777_v20 = vld [vmem:[%s1055_s2 + $0x98] sm:$0xff]  ;;  %v96_v24 = vld [vmem:[%s1056_s1 + $0x10] sm:$0xff] }
   0x8   :  { %473 = vmatpush.bf16.msra.mxu2 %v780_v6  ;;  %v786_v16 = vld [vmem:[%s1055_s2 + $0xe0] sm:$0xff]  ;;  %v785_v21 = vld [vmem:[%s1055_s2 + $0xd8] sm:$0xff]  ;;  %v776_v25 = vld [vmem:[%s1055_s2 + $0x90] sm:$0xff]  ;;  %114 = vperm.xlu1 %792, %v96_v24  }
   0x9   :  { %502 = vmatpush.bf16.msra.mxu3 %v788_v7  ;;  %v94_v17 = vld [vmem:[%s1056_s1] sm:$0xff]  ;;  %v784_v26 = vld [vmem:[%s1055_s2 + $0xd0] sm:$0xff]  ;;  %v95_v27 = vld [vmem:[%s1056_s1 + $0x8] sm:$0xff] }
   0xa   :  { %416 = vmatpush.bf16.msra.mxu0 %v763_v9  ;;  %104 = vperm.xlu0 %791, %v94_v17   ;;  %v759_v28 = vld [vmem:[%s1055_s2 + $0x8] sm:$0xff]  ;;  %v758_v32 = vld [vmem:[%s1055_s2] sm:$0xff]  ;;  %v744_v37 = vld [vmem:[%s1057_s0 + $0xc] sm:$0xf0] }
   0xb   :  { %445 = vmatpush.bf16.msra.mxu1 %v771_v10  ;;  %v767_v29 = vld [vmem:[%s1055_s2 + $0x48] sm:$0xff]  ;;  %v766_v33 = vld [vmem:[%s1055_s2 + $0x40] sm:$0xff]  ;;  %v554_v39 = vld [vmem:[%s1057_s0 + $0x10] sm:$0xf0] }
   0xc   :  { %474 = vmatpush.bf16.msra.mxu2 %v779_v11  ;;  %v775_v30 = vld [vmem:[%s1055_s2 + $0x88] sm:$0xff]  ;;  %v774_v34 = vld [vmem:[%s1055_s2 + $0x80] sm:$0xff]  ;;  %v745_v41 = vld [vmem:[%s1057_s0 + $0x14] sm:$0xf0] }
   0xd   :  { %503 = vmatpush.bf16.msra.mxu3 %v787_v12  ;;  %v783_v31 = vld [vmem:[%s1055_s2 + $0xc8] sm:$0xff]  ;;  %v782_v35 = vld [vmem:[%s1055_s2 + $0xc0] sm:$0xff]  ;;  %v562_v43 = vld [vmem:[%s1057_s0 + $0x18] sm:$0xf0] }
   0xe   :  { %417 = vmatpush.bf16.msra.mxu0 %v762_v13  ;;  %v552_v36 = vld [vmem:[%s1057_s0] sm:$0xf]  ;;  %v742_v38 = vld [vmem:[%s1057_s0 + $0x4] sm:$0xf]  ;;  %v560_v40 = vld [vmem:[%s1057_s0 + $0x8] sm:$0xf] }
   0xf   :  { %446 = vmatpush.bf16.msra.mxu1 %v770_v14  ;;  %v743_v42 = vld [vmem:[%s1057_s0 + $0xc] sm:$0xf]  ;;  %v553_v44 = vor.u32 %v744_v37, %v552_v36  ;;  %v557_v45 = vor.u32 %v742_v38, %v554_v39  ;;  %v561_v46 = vor.u32 %v745_v41, %v560_v40  ;;  %v97_v48 = vld [vmem:[%s1056_s1 + $0x18] sm:$0xff]  ;;  %v568_v49 = vld [vmem:[%s1057_s0 + $0x20] sm:$0xf] }
  0x10   :  { %475 = vmatpush.bf16.msra.mxu2 %v778_v15  ;;  %v565_v47 = vor.u32 %v743_v42, %v562_v43  ;;  %119 = vperm.xlu1 %792, %v97_v48   ;;  %v748_v50 = vld [vmem:[%s1057_s0 + $0x2c] sm:$0xf0]  ;;  %v746_v51 = vld [vmem:[%s1057_s0 + $0x24] sm:$0xf]  ;;  %v570_v52 = vld [vmem:[%s1057_s0 + $0x30] sm:$0xf0] }
  0x11   :  { %504 = vmatpush.bf16.msra.mxu3 %v786_v16  ;;  %v576_v53 = vld [vmem:[%s1057_s0 + $0x28] sm:$0xf]  ;;  %v749_v54 = vld [vmem:[%s1057_s0 + $0x34] sm:$0xf0]  ;;  %v747_v55 = vld [vmem:[%s1057_s0 + $0x2c] sm:$0xf]  ;;  %v569_v57 = vor.u32 %v748_v50, %v568_v49  ;;  %v573_v58 = vor.u32 %v746_v51, %v570_v52 }
  0x12   :  { %418 = vmatpush.bf16.msra.mxu0 %v761_v18  ;;  %109 = vperm.xlu0 %791, %v95_v27   ;;  %v578_v56 = vld [vmem:[%s1057_s0 + $0x38] sm:$0xf0]  ;;  %v577_v59 = vor.u32 %v749_v54, %v576_v53  ;;  %v100_v62 = vld [vmem:[%s1056_s1 + $0x30] sm:$0xff]  ;;  %v98_v63 = vld [vmem:[%s1056_s1 + $0x20] sm:$0xff] }
  0x13   :  { %447 = vmatpush.bf16.msra.mxu1 %v769_v19  ;;  %v581_v60 = vor.u32 %v747_v55, %v578_v56  ;;  %v101_v61 = vld [vmem:[%s1056_s1 + $0x38] sm:$0xff]  ;;  %124 = vperm.xlu2 %793, %v98_v63   ;;  %v584_v0 = vld [vmem:[%s1057_s0 + $0x40] sm:$0xf]  ;;  %v752_v1 = vld [vmem:[%s1057_s0 + $0x4c] sm:$0xf0] }
  0x14   :  { %476 = vmatpush.bf16.msra.mxu2 %v777_v20  ;;  %v99_v2 = vld [vmem:[%s1056_s1 + $0x28] sm:$0xff]  ;;  %v750_v3 = vld [vmem:[%s1057_s0 + $0x44] sm:$0xf]  ;;  %v586_v4 = vld [vmem:[%s1057_s0 + $0x50] sm:$0xf0]  ;;  %v585_v9 = vor.u32 %v752_v1, %v584_v0 }
  0x15   :  { %505 = vmatpush.bf16.msra.mxu3 %v785_v21  ;;  %v592_v5 = vld [vmem:[%s1057_s0 + $0x48] sm:$0xf]  ;;  %v753_v6 = vld [vmem:[%s1057_s0 + $0x54] sm:$0xf0]  ;;  %v751_v7 = vld [vmem:[%s1057_s0 + $0x4c] sm:$0xf]  ;;  %v589_v10 = vor.u32 %v750_v3, %v586_v4 }
  0x16   :  { %419 = vmatpush.bf16.msra.mxu0 %v760_v22  ;;  %v594_v8 = vld [vmem:[%s1057_s0 + $0x58] sm:$0xf0]  ;;  %v593_v11 = vor.u32 %v753_v6, %v592_v5  ;;  %v600_v13 = vld [vmem:[%s1057_s0 + $0x60] sm:$0xf]  ;;  %v756_v14 = vld [vmem:[%s1057_s0 + $0x6c] sm:$0xf0] }
  0x17   :  { %448 = vmatpush.bf16.msra.mxu1 %v768_v23  ;;  %v597_v12 = vor.u32 %v751_v7, %v594_v8  ;;  %v754_v15 = vld [vmem:[%s1057_s0 + $0x64] sm:$0xf]  ;;  %v602_v16 = vld [vmem:[%s1057_s0 + $0x70] sm:$0xf0]  ;;  %v608_v17 = vld [vmem:[%s1057_s0 + $0x68] sm:$0xf]  ;;  %v601_v21 = vor.u32 %v756_v14, %v600_v13 }
  0x18   :  { %477 = vmatpush.bf16.msra.mxu2 %v776_v25  ;;  %139 = vperm.xlu1 %792, %v101_v61   ;;  %v757_v18 = vld [vmem:[%s1057_s0 + $0x74] sm:$0xf0]  ;;  %v755_v19 = vld [vmem:[%s1057_s0 + $0x6c] sm:$0xf]  ;;  %v610_v20 = vld [vmem:[%s1057_s0 + $0x78] sm:$0xf0]  ;;  %v605_v22 = vor.u32 %v754_v15, %v602_v16 }
  0x19   :  { %506 = vmatpush.bf16.msra.mxu3 %v784_v26  ;;  %v609_v23 = vor.u32 %v757_v18, %v608_v17  ;;  %v613_v24 = vor.u32 %v755_v19, %v610_v20 }
  0x1a   :  { %420 = vmatpush.bf16.msra.mxu0 %v759_v28  ;;  %134 = vperm.xlu0 %791, %v100_v62  }
  0x1b   :  { %449 = vmatpush.bf16.msra.mxu1 %v767_v29  ;;  %129 = vperm.xlu2 %793, %v99_v2  }
  0x1c   :  { %478 = vmatpush.bf16.msra.mxu2 %v775_v30 }
  0x1d   :  { %507 = vmatpush.bf16.msra.mxu3 %v783_v31 }
  0x1e   :  { %421 = vmatpush.bf16.msra.mxu0 %v758_v32 }
  0x1f   :  { %450 = vmatpush.bf16.msra.mxu1 %v766_v33 }
  0x20   :  { %479 = vmatpush.bf16.msra.mxu2 %v774_v34 }
  0x21   :  { %508 = vmatpush.bf16.msra.mxu3 %v782_v35  ;;  %422 = vmatmul.bf16.vlgmr.msra.gmra.mxu0 %v553_v44 }
  0x22   :  { %451 = vmatmul.bf16.vlgmr.msra.gmra.mxu1 %v557_v45 }
  0x23   :  { %480 = vmatmul.bf16.vlgmr.msra.gmra.mxu2 %v561_v46 }
  0x24   :  { %509 = vmatmul.bf16.vlgmr.msra.gmra.mxu3 %v565_v47 }
  0x31   :  { %427 = vmatmul.bf16.gmra.mxu0 %v569_v57 }
  0x32   :  { %456 = vmatmul.bf16.gmra.mxu1 %v573_v58 }
  0x33   :  { %485 = vmatmul.bf16.gmra.mxu2 %v577_v59 }
  0x34   :  { %514 = vmatmul.bf16.gmra.mxu3 %v581_v60 }
  0x41   :  { %432 = vmatmul.bf16.gmra.mxu0 %v585_v9 }
  0x42   :  { %461 = vmatmul.bf16.gmra.mxu1 %v589_v10 }
  0x43   :  { %490 = vmatmul.bf16.gmra.mxu2 %v593_v11 }
  0x44   :  { %519 = vmatmul.bf16.gmra.mxu3 %v597_v12 }
  0x51   :  { %437 = vmatmul.bf16.gmra.mxu0 %v601_v21 }
  0x52   :  { %466 = vmatmul.bf16.gmra.mxu1 %v605_v22 }
  0x53   :  { %495 = vmatmul.bf16.gmra.mxu2 %v609_v23 }
  0x54   :  { %524 = vmatmul.bf16.gmra.mxu3 %v613_v24 }
  0x6d   :  { %v125_v59 = vpop.permute.xlu2 %124 }
  0x75   :  { %v130_v6 = vpop.permute.xlu2 %129 }
  0x7a   :  { %v115_v39 = vpop.permute.xlu1 %114 }
  0x7c   :  { %v105_v25 = vpop.permute.xlu0 %104 }
  0x82   :  { %v120_v50 = vpop.permute.xlu1 %119 }
  0x84   :  { %v110_v30 = vpop.permute.xlu0 %109 }
  0x8c   :  { %v135_v20 = vpop.permute.xlu0 %134 }
  0x9e   :  { %v423_v26 = vpop.f32.mrf.mxu0 }
  0x9f   :  { %v452_v27 = vpop.f32.mrf.mxu1  ;;  %v424_v28 = vadd.f32 %v423_v26, %v105_v25 }
  0xa1   :  { %v453_v29 = vadd.f32 %v452_v27, %v424_v28 }
  0xa6   :  { %v481_v31 = vpop.f32.mrf.mxu2  ;;  %v425_v34 = vpop.f32.mrf.mxu0 }
  0xa7   :  { %v510_v32 = vpop.f32.mrf.mxu3  ;;  %v482_v33 = vadd.f32 %v481_v31, %v453_v29  ;;  %v454_v35 = vpop.f32.mrf.mxu1  ;;  %v426_v37 = vadd.f32 %v425_v34, %v110_v30 }
  0xa8   :  { %v140_v30 = vpop.permute.xlu1 %139 }
  0xa9   :  { %v511_v36 = vadd.f32 %v510_v32, %v482_v33  ;;  %v455_v40 = vadd.f32 %v454_v35, %v426_v37 }
  0xab   :  { %v530_v38 = vmax.f32 %v511_v36, 0.0 }
  0xad   :  { %538 = vst [vmem:[%s1058_s3] sm:$0xff] %v530_v38 }
  0xae   :  { %v483_v41 = vpop.f32.mrf.mxu2  ;;  %v428_v44 = vpop.f32.mrf.mxu0 }
  0xaf   :  { %v512_v42 = vpop.f32.mrf.mxu3  ;;  %v484_v43 = vadd.f32 %v483_v41, %v455_v40  ;;  %v457_v45 = vpop.f32.mrf.mxu1  ;;  %v429_v46 = vadd.f32 %v428_v44, %v115_v39 }
  0xb1   :  { %v513_v47 = vadd.f32 %v512_v42, %v484_v43  ;;  %v458_v49 = vadd.f32 %v457_v45, %v429_v46 }
  0xb3   :  { %v531_v48 = vmax.f32 %v513_v47, 0.0 }
  0xb5   :  { %539 = vst [vmem:[%s1058_s3 + $0x8] sm:$0xff] %v531_v48 }
  0xb6   :  { %v486_v51 = vpop.f32.mrf.mxu2  ;;  %v430_v54 = vpop.f32.mrf.mxu0 }
  0xb7   :  { %v515_v52 = vpop.f32.mrf.mxu3  ;;  %v487_v53 = vadd.f32 %v486_v51, %v458_v49  ;;  %v459_v55 = vpop.f32.mrf.mxu1  ;;  %v431_v57 = vadd.f32 %v430_v54, %v120_v50 }
  0xb9   :  { %v516_v56 = vadd.f32 %v515_v52, %v487_v53  ;;  %v460_v60 = vadd.f32 %v459_v55, %v431_v57 }
  0xbb   :  { %v532_v58 = vmax.f32 %v516_v56, 0.0 }
  0xbd   :  { %540 = vst [vmem:[%s1058_s3 + $0x10] sm:$0xff] %v532_v58 }
  0xbe   :  { %v488_v61 = vpop.f32.mrf.mxu2  ;;  %v433_v0 = vpop.f32.mrf.mxu0 }
  0xbf   :  { %v517_v62 = vpop.f32.mrf.mxu3  ;;  %v489_v63 = vadd.f32 %v488_v61, %v460_v60  ;;  %v462_v1 = vpop.f32.mrf.mxu1  ;;  %v434_v2 = vadd.f32 %v433_v0, %v125_v59 }
  0xc1   :  { %v518_v3 = vadd.f32 %v517_v62, %v489_v63  ;;  %v463_v5 = vadd.f32 %v462_v1, %v434_v2 }
  0xc3   :  { %v533_v4 = vmax.f32 %v518_v3, 0.0 }
  0xc5   :  { %541 = vst [vmem:[%s1058_s3 + $0x18] sm:$0xff] %v533_v4 }
  0xc6   :  { %v491_v7 = vpop.f32.mrf.mxu2  ;;  %v435_v10 = vpop.f32.mrf.mxu0 }
  0xc7   :  { %v520_v8 = vpop.f32.mrf.mxu3  ;;  %v492_v9 = vadd.f32 %v491_v7, %v463_v5  ;;  %v464_v11 = vpop.f32.mrf.mxu1  ;;  %v436_v13 = vadd.f32 %v435_v10, %v130_v6 }
  0xc9   :  { %v521_v12 = vadd.f32 %v520_v8, %v492_v9  ;;  %v465_v15 = vadd.f32 %v464_v11, %v436_v13 }
  0xcb   :  { %v534_v14 = vmax.f32 %v521_v12, 0.0 }
  0xcd   :  { %542 = vst [vmem:[%s1058_s3 + $0x20] sm:$0xff] %v534_v14 }
  0xce   :  { %v493_v16 = vpop.f32.mrf.mxu2  ;;  %v438_v19 = vpop.f32.mrf.mxu0 }
  0xcf   :  { %v522_v17 = vpop.f32.mrf.mxu3  ;;  %v494_v18 = vadd.f32 %v493_v16, %v465_v15  ;;  %v439_v22 = vadd.f32 %v438_v19, %v135_v20  ;;  %v467_v23 = vpop.f32.mrf.mxu1 }
  0xd1   :  { %v523_v21 = vadd.f32 %v522_v17, %v494_v18  ;;  %v468_v25 = vadd.f32 %v467_v23, %v439_v22 }
  0xd3   :  { %v535_v24 = vmax.f32 %v523_v21, 0.0 }
  0xd5   :  { %543 = vst [vmem:[%s1058_s3 + $0x28] sm:$0xff] %v535_v24 }
  0xd6   :  { %v496_v26 = vpop.f32.mrf.mxu2  ;;  %v440_v29 = vpop.f32.mrf.mxu0 }
  0xd7   :  { %v525_v27 = vpop.f32.mrf.mxu3  ;;  %v497_v28 = vadd.f32 %v496_v26, %v468_v25  ;;  %v441_v32 = vadd.f32 %v440_v29, %v140_v30  ;;  %v469_v34 = vpop.f32.mrf.mxu1 }
  0xd9   :  { %v526_v31 = vadd.f32 %v525_v27, %v497_v28  ;;  %v470_v35 = vadd.f32 %v469_v34, %v441_v32 }
  0xdb   :  { %v536_v33 = vmax.f32 %v526_v31, 0.0 }
  0xdd   :  { %544 = vst [vmem:[%s1058_s3 + $0x30] sm:$0xff] %v536_v33 }
  0xde   :  { %v498_v36 = vpop.f32.mrf.mxu2 }
  0xdf   :  { %v499_v37 = vadd.f32 %v498_v36, %v470_v35  ;;  %v527_v38 = vpop.f32.mrf.mxu3 }
  0xe1   :  { %v528_v39 = vadd.f32 %v527_v38, %v499_v37 }
  0xe3   :  { %v537_v40 = vmax.f32 %v528_v39, 0.0 }
  0xe5   :  { %545 = vst [vmem:[%s1058_s3 + $0x38] sm:$0xff] %v537_v40 }

</bundles_post_ra>
